<compile_context>
chip_gen: v5e
topology: v5e:2x2
jax: 0.10.0
libtpu: 0.0.40
codegen_flags: <defaults>
</compile_context>

<pallas_src>
import numpy as np
import jax
import jax.numpy as jnp
from jax.experimental import pallas as pl
from jax.experimental.pallas import tpu as pltpu


# ----------------------------- configuration --------------------------------
ENC_OUT_DIM = 64        # encoder.out_dim
HIDDEN_DIM = 32         # hidden_dim
ACTION_DIM = 4          # action_shape[0]
BATCH = 2
LOG_STD_MIN = -10.0
LOG_STD_MAX = 2.0
PACKED_DIM = 4 * ACTION_DIM          # mu(4) | pi(4) | log_std(4) | log_pi(x4)


# ------------------------------- Pallas kernel ------------------------------
def _actor_kernel(x_ref, w1_ref, b1_ref, w2_ref, b2_ref,
                  w3m_ref, b3m_ref, w3s_ref, b3s_ref, noise_ref,
                  out_ref):
    """Actor head (MLP + squashed-Gaussian policy), one batch tile per grid step."""
    x = x_ref[...]

    # MLP: Linear -> ReLU -> Linear -> ReLU -> (split head)
    h1 = jnp.dot(x, w1_ref[...], preferred_element_type=jnp.float32) + b1_ref[...]
    h1 = jnp.maximum(h1, 0.0)
    h2 = jnp.dot(h1, w2_ref[...], preferred_element_type=jnp.float32) + b2_ref[...]
    h2 = jnp.maximum(h2, 0.0)

    # Head split in the wrapper: both halves land at lane 0 (no in-kernel slice).
    mu = jnp.dot(h2, w3m_ref[...], preferred_element_type=jnp.float32) + b3m_ref[...]
    log_std = jnp.dot(h2, w3s_ref[...], preferred_element_type=jnp.float32) + b3s_ref[...]

    # log_std squashing / rescaling
    log_std = jnp.tanh(log_std)
    log_std = LOG_STD_MIN + 0.5 * (LOG_STD_MAX - LOG_STD_MIN) * (log_std + 1.0)

    # pi = mu + noise * std   (compute_pi=True)
    std = jnp.exp(log_std)
    noise = noise_ref[...]
    pi = mu + noise * std

    # gaussian_logprob(noise, log_std)   (compute_log_pi=True)
    residual = jnp.sum(-0.5 * noise * noise - log_std, axis=-1, keepdims=True)
    log_pi = residual - 0.5 * np.log(2.0 * np.pi) * ACTION_DIM

    # squash(mu, pi, log_pi)  -- keep reference-identical form for bit-compat
    mu_t = jnp.tanh(mu)
    pi_t = jnp.tanh(pi)
    log_pi = log_pi - jnp.sum(
        jnp.log(jnp.maximum(1.0 - pi_t * pi_t, 0.0) + 1e-06),
        axis=-1, keepdims=True)

    # Single packed, lane-contiguous store: mu | pi | log_std | log_pi(bcast)
    log_pi_b = jnp.broadcast_to(log_pi, (mu_t.shape[0], ACTION_DIM))
    out_ref[...] = jnp.concatenate([mu_t, pi_t, log_std, log_pi_b], axis=-1)


# --------------------------------- wrapper -----------------------------------
def _pad_rows(a, n_rows):
    pad = n_rows - a.shape[0]
    if pad == 0:
        return a
    return jnp.concatenate(
        [a, jnp.zeros((pad,) + a.shape[1:], a.dtype)], axis=0)


def actor_forward(x, params, noise, *, block_b=512):
    """Runs the whole Actor forward as a grid-tiled Pallas call.

    Returns (mu, pi, log_pi, log_std), matching the PyTorch module.
    """
    w1, b1, w2, b2, w3, b3 = params
    # Split the head so the kernel never slices at a non-zero lane offset.
    w3m, w3s = w3[:, :ACTION_DIM], w3[:, ACTION_DIM:]
    b3m, b3s = b3[:, :ACTION_DIM], b3[:, ACTION_DIM:]

    B, D = x.shape
    # Pad batch to a full f32 sublane tile and choose a batch tile TB.
    B8 = max(8, ((B + 7) // 8) * 8)
    TB = max(8, (min(block_b, B8) // 8) * 8)
    B_pad = ((B8 + TB - 1) // TB) * TB
    x_p = _pad_rows(x, B_pad)
    noise_p = _pad_rows(noise, B_pad)

    grid = (B_pad // TB,)
    const = lambda i: (0, 0)   # weights/biases stay VMEM-resident across steps

    packed = pl.pallas_call(
        _actor_kernel,
        out_shape=jax.ShapeDtypeStruct((B_pad, PACKED_DIM), jnp.float32),
        grid_spec=pltpu.PrefetchScalarGridSpec(
            num_scalar_prefetch=0,
            grid=grid,
            in_specs=[
                pl.BlockSpec((TB, D), lambda i: (i, 0)),          # x
                pl.BlockSpec(w1.shape, const),                    # w1
                pl.BlockSpec(b1.shape, const),                    # b1
                pl.BlockSpec(w2.shape, const),                    # w2
                pl.BlockSpec(b2.shape, const),                    # b2
                pl.BlockSpec(w3m.shape, const),                   # w3_mu
                pl.BlockSpec(b3m.shape, const),                   # b3_mu
                pl.BlockSpec(w3s.shape, const),                   # w3_log_std
                pl.BlockSpec(b3s.shape, const),                   # b3_log_std
                pl.BlockSpec((TB, ACTION_DIM), lambda i: (i, 0)), # noise
            ],
            out_specs=pl.BlockSpec((TB, PACKED_DIM), lambda i: (i, 0)),
        ),
        compiler_params=pltpu.CompilerParams(
            dimension_semantics=("parallel",)),
    )(x_p, w1, b1, w2, b2, w3m, b3m, w3s, b3s, noise_p)

    # Unpack (and drop batch padding) on the JAX side.
    a = ACTION_DIM
    mu = packed[:B, 0:a]
    pi = packed[:B, a:2 * a]
    log_std = packed[:B, 2 * a:3 * a]
    log_pi = packed[:B, 3 * a:3 * a + 1]
    return mu, pi, log_pi, log_std


# ------------------------- deterministic parameter init ----------------------
def _orthogonal(key, out_dim, in_dim):
    """nn.init.orthogonal_ on a PyTorch (out, in) weight, returned transposed (in, out)."""
    w = jax.nn.initializers.orthogonal(scale=1.0)(key, (out_dim, in_dim), jnp.float32)
    return jnp.transpose(w)  # store as (in, out) for x @ W


def make_params(key):
    k1, k2, k3 = jax.random.split(key, 3)
    w1 = _orthogonal(k1, HIDDEN_DIM, ENC_OUT_DIM)            # (64, 32)
    b1 = jnp.zeros((1, HIDDEN_DIM), jnp.float32)
    w2 = _orthogonal(k2, HIDDEN_DIM, HIDDEN_DIM)              # (32, 32)
    b2 = jnp.zeros((1, HIDDEN_DIM), jnp.float32)
    w3 = _orthogonal(k3, 2 * ACTION_DIM, HIDDEN_DIM)          # (32, 8)
    b3 = jnp.zeros((1, 2 * ACTION_DIM), jnp.float32)
    return (w1, b1, w2, b2, w3, b3)


# ------------------------------ pure-JAX reference ---------------------------
def actor_reference(x, params, noise):
    w1, b1, w2, b2, w3, b3 = params
    h = jax.nn.relu(x @ w1 + b1)
    h = jax.nn.relu(h @ w2 + b2)
    out = h @ w3 + b3
    mu, log_std = out[:, :ACTION_DIM], out[:, ACTION_DIM:]
    log_std = jnp.tanh(log_std)
    log_std = LOG_STD_MIN + 0.5 * (LOG_STD_MAX - LOG_STD_MIN) * (log_std + 1.0)
    std = jnp.exp(log_std)
    pi = mu + noise * std
    residual = jnp.sum(-0.5 * noise ** 2 - log_std, axis=-1, keepdims=True)
    log_pi = residual - 0.5 * np.log(2.0 * np.pi) * ACTION_DIM
    mu_t, pi_t = jnp.tanh(mu), jnp.tanh(pi)
    log_pi = log_pi - jnp.sum(jnp.log(jax.nn.relu(1.0 - pi_t ** 2) + 1e-06),
                              axis=-1, keepdims=True)
    return mu_t, pi_t, log_pi, log_std


# ------------------------------------ main -----------------------------------
if __name__ == "__main__":
    key = jax.random.PRNGKey(0)
    k_param, k_x, k_noise = jax.random.split(key, 3)

    params = make_params(k_param)
    # x: pre-encoded features (identity encoder), shape (B, ENC_OUT_DIM)
    x = jax.random.normal(k_x, (BATCH, ENC_OUT_DIM), jnp.float32)
    # torch.randn_like(mu) -> deterministic gaussian noise passed into the kernel
    noise = jax.random.normal(k_noise, (BATCH, ACTION_DIM), jnp.float32)

    mu, pi, log_pi, log_std = jax.block_until_ready(actor_forward(x, params, noise))

    # sanity check against pure-JAX reference
    mu_r, pi_r, log_pi_r, log_std_r = actor_reference(x, params, noise)
    np.testing.assert_allclose(np.asarray(mu), np.asarray(mu_r), rtol=1e-5, atol=1e-5)
    np.testing.assert_allclose(np.asarray(pi), np.asarray(pi_r), rtol=1e-5, atol=1e-5)
    np.testing.assert_allclose(np.asarray(log_pi), np.asarray(log_pi_r), rtol=1e-5, atol=1e-5)
    np.testing.assert_allclose(np.asarray(log_std), np.asarray(log_std_r), rtol=1e-5, atol=1e-5)

    print("KERNEL_OK")
</pallas_src>

<mosaic_0001>
module attributes {stable_mosaic.version = 11 : i64} {
  func.func @_actor_kernel(%arg0: i32, %arg1: memref<8x64xf32, #tpu.memory_space<vmem>>, %arg2: memref<64x32xf32, #tpu.memory_space<vmem>>, %arg3: memref<1x32xf32, #tpu.memory_space<vmem>>, %arg4: memref<32x32xf32, #tpu.memory_space<vmem>>, %arg5: memref<1x32xf32, #tpu.memory_space<vmem>>, %arg6: memref<32x4xf32, #tpu.memory_space<vmem>>, %arg7: memref<1x4xf32, #tpu.memory_space<vmem>>, %arg8: memref<32x4xf32, #tpu.memory_space<vmem>>, %arg9: memref<1x4xf32, #tpu.memory_space<vmem>>, %arg10: memref<8x4xf32, #tpu.memory_space<vmem>>, %arg11: memref<8x16xf32, #tpu.memory_space<vmem>>) attributes {dimension_semantics = [#tpu.dimension_semantics<parallel>], iteration_bounds = array<i64: 1>, scalar_prefetch = 0 : i64, scratch_operands = 0 : i64, tpu.core_type = #tpu.core_type<tc>, window_params = [{transform_indices = @transform_0, window_bounds = array<i64: 8, 64>}, {pipeline_mode = #tpu.pipeline_mode<synchronous>, transform_indices = @transform_1, window_bounds = array<i64: 64, 32>}, {pipeline_mode = #tpu.pipeline_mode<synchronous>, transform_indices = @transform_2, window_bounds = array<i64: 1, 32>}, {pipeline_mode = #tpu.pipeline_mode<synchronous>, transform_indices = @transform_3, window_bounds = array<i64: 32, 32>}, {pipeline_mode = #tpu.pipeline_mode<synchronous>, transform_indices = @transform_4, window_bounds = array<i64: 1, 32>}, {pipeline_mode = #tpu.pipeline_mode<synchronous>, transform_indices = @transform_5, window_bounds = array<i64: 32, 4>}, {pipeline_mode = #tpu.pipeline_mode<synchronous>, transform_indices = @transform_6, window_bounds = array<i64: 1, 4>}, {pipeline_mode = #tpu.pipeline_mode<synchronous>, transform_indices = @transform_7, window_bounds = array<i64: 32, 4>}, {pipeline_mode = #tpu.pipeline_mode<synchronous>, transform_indices = @transform_8, window_bounds = array<i64: 1, 4>}, {transform_indices = @transform_9, window_bounds = array<i64: 8, 4>}, {transform_indices = @transform_10, window_bounds = array<i64: 8, 16>}]} {
    %c0 = arith.constant 0 : index
    %c0_0 = arith.constant 0 : index
    %0 = vector.load %arg1[%c0, %c0_0] : memref<8x64xf32, #tpu.memory_space<vmem>>, vector<8x64xf32>
    %c0_1 = arith.constant 0 : index
    %c0_2 = arith.constant 0 : index
    %1 = vector.load %arg2[%c0_1, %c0_2] : memref<64x32xf32, #tpu.memory_space<vmem>>, vector<64x32xf32>
    %cst = arith.constant dense<0.000000e+00> : vector<8x32xf32>
    %2 = tpu.matmul %0, %1, %cst {dimension_numbers = #tpu.dot_dimension_numbers<[1], [0], [0], [1], [0, 0, 1, 1], [], []>} : vector<8x64xf32>, vector<64x32xf32>, vector<8x32xf32> -> vector<8x32xf32>
    %c0_3 = arith.constant 0 : index
    %c0_4 = arith.constant 0 : index
    %3 = vector.load %arg3[%c0_3, %c0_4] : memref<1x32xf32, #tpu.memory_space<vmem>>, vector<1x32xf32>
    %4 = vector.broadcast %3 : vector<1x32xf32> to vector<8x32xf32>
    %5 = arith.addf %2, %4 : vector<8x32xf32>
    %cst_5 = arith.constant 0.000000e+00 : f32
    %6 = vector.broadcast %cst_5 : f32 to vector<8x32xf32>
    %7 = arith.maximumf %5, %6 : vector<8x32xf32>
    %c0_6 = arith.constant 0 : index
    %c0_7 = arith.constant 0 : index
    %8 = vector.load %arg4[%c0_6, %c0_7] : memref<32x32xf32, #tpu.memory_space<vmem>>, vector<32x32xf32>
    %cst_8 = arith.constant dense<0.000000e+00> : vector<8x32xf32>
    %9 = tpu.matmul %7, %8, %cst_8 {dimension_numbers = #tpu.dot_dimension_numbers<[1], [0], [0], [1], [0, 0, 1, 1], [], []>} : vector<8x32xf32>, vector<32x32xf32>, vector<8x32xf32> -> vector<8x32xf32>
    %c0_9 = arith.constant 0 : index
    %c0_10 = arith.constant 0 : index
    %10 = vector.load %arg5[%c0_9, %c0_10] : memref<1x32xf32, #tpu.memory_space<vmem>>, vector<1x32xf32>
    %11 = vector.broadcast %10 : vector<1x32xf32> to vector<8x32xf32>
    %12 = arith.addf %9, %11 : vector<8x32xf32>
    %cst_11 = arith.constant 0.000000e+00 : f32
    %13 = vector.broadcast %cst_11 : f32 to vector<8x32xf32>
    %14 = arith.maximumf %12, %13 : vector<8x32xf32>
    %c0_12 = arith.constant 0 : index
    %c0_13 = arith.constant 0 : index
    %15 = vector.load %arg6[%c0_12, %c0_13] : memref<32x4xf32, #tpu.memory_space<vmem>>, vector<32x4xf32>
    %cst_14 = arith.constant dense<0.000000e+00> : vector<8x4xf32>
    %16 = tpu.matmul %14, %15, %cst_14 {dimension_numbers = #tpu.dot_dimension_numbers<[1], [0], [0], [1], [0, 0, 1, 1], [], []>} : vector<8x32xf32>, vector<32x4xf32>, vector<8x4xf32> -> vector<8x4xf32>
    %c0_15 = arith.constant 0 : index
    %c0_16 = arith.constant 0 : index
    %17 = vector.load %arg7[%c0_15, %c0_16] : memref<1x4xf32, #tpu.memory_space<vmem>>, vector<1x4xf32>
    %18 = vector.broadcast %17 : vector<1x4xf32> to vector<8x4xf32>
    %19 = arith.addf %16, %18 : vector<8x4xf32>
    %c0_17 = arith.constant 0 : index
    %c0_18 = arith.constant 0 : index
    %20 = vector.load %arg8[%c0_17, %c0_18] : memref<32x4xf32, #tpu.memory_space<vmem>>, vector<32x4xf32>
    %cst_19 = arith.constant dense<0.000000e+00> : vector<8x4xf32>
    %21 = tpu.matmul %14, %20, %cst_19 {dimension_numbers = #tpu.dot_dimension_numbers<[1], [0], [0], [1], [0, 0, 1, 1], [], []>} : vector<8x32xf32>, vector<32x4xf32>, vector<8x4xf32> -> vector<8x4xf32>
    %c0_20 = arith.constant 0 : index
    %c0_21 = arith.constant 0 : index
    %22 = vector.load %arg9[%c0_20, %c0_21] : memref<1x4xf32, #tpu.memory_space<vmem>>, vector<1x4xf32>
    %23 = vector.broadcast %22 : vector<1x4xf32> to vector<8x4xf32>
    %24 = arith.addf %21, %23 : vector<8x4xf32>
    %25 = math.tanh %24 : vector<8x4xf32>
    %cst_22 = arith.constant 1.000000e+00 : f32
    %26 = vector.broadcast %cst_22 : f32 to vector<8x4xf32>
    %27 = arith.addf %25, %26 : vector<8x4xf32>
    %cst_23 = arith.constant 6.000000e+00 : f32
    %28 = vector.broadcast %cst_23 : f32 to vector<8x4xf32>
    %29 = arith.mulf %28, %27 : vector<8x4xf32>
    %cst_24 = arith.constant -1.000000e+01 : f32
    %30 = vector.broadcast %cst_24 : f32 to vector<8x4xf32>
    %31 = arith.addf %30, %29 : vector<8x4xf32>
    %32 = math.exp %31 : vector<8x4xf32>
    %c0_25 = arith.constant 0 : index
    %c0_26 = arith.constant 0 : index
    %33 = vector.load %arg10[%c0_25, %c0_26] : memref<8x4xf32, #tpu.memory_space<vmem>>, vector<8x4xf32>
    %34 = arith.mulf %33, %32 : vector<8x4xf32>
    %35 = arith.addf %19, %34 : vector<8x4xf32>
    %cst_27 = arith.constant -5.000000e-01 : f32
    %36 = vector.broadcast %cst_27 : f32 to vector<8x4xf32>
    %37 = arith.mulf %36, %33 : vector<8x4xf32>
    %38 = arith.mulf %37, %33 : vector<8x4xf32>
    %39 = arith.subf %38, %31 : vector<8x4xf32>
    %cst_28 = arith.constant dense<0.000000e+00> : vector<8xf32>
    %40 = vector.multi_reduction <add>, %39, %cst_28 [1] : vector<8x4xf32> to vector<8xf32>
    %41 = vector.shape_cast %40 : vector<8xf32> to vector<8x1xf32>
    %cst_29 = arith.constant 3.67575407 : f32
    %42 = vector.broadcast %cst_29 : f32 to vector<8x1xf32>
    %43 = arith.subf %41, %42 : vector<8x1xf32>
    %44 = math.tanh %19 : vector<8x4xf32>
    %45 = math.tanh %35 : vector<8x4xf32>
    %46 = arith.mulf %45, %45 : vector<8x4xf32>
    %cst_30 = arith.constant 1.000000e+00 : f32
    %47 = vector.broadcast %cst_30 : f32 to vector<8x4xf32>
    %48 = arith.subf %47, %46 : vector<8x4xf32>
    %cst_31 = arith.constant 0.000000e+00 : f32
    %49 = vector.broadcast %cst_31 : f32 to vector<8x4xf32>
    %50 = arith.maximumf %48, %49 : vector<8x4xf32>
    %cst_32 = arith.constant 9.99999997E-7 : f32
    %51 = vector.broadcast %cst_32 : f32 to vector<8x4xf32>
    %52 = arith.addf %50, %51 : vector<8x4xf32>
    %53 = math.log %52 : vector<8x4xf32>
    %cst_33 = arith.constant dense<0.000000e+00> : vector<8xf32>
    %54 = vector.multi_reduction <add>, %53, %cst_33 [1] : vector<8x4xf32> to vector<8xf32>
    %55 = vector.shape_cast %54 : vector<8xf32> to vector<8x1xf32>
    %56 = arith.subf %43, %55 : vector<8x1xf32>
    %57 = vector.shape_cast %56 : vector<8x1xf32> to vector<8x1xf32>
    %58 = vector.broadcast %57 : vector<8x1xf32> to vector<8x4xf32>
    %59 = tpu.concatenate %44, %45, %31, %58 in 1 : vector<8x4xf32>, vector<8x4xf32>, vector<8x4xf32>, vector<8x4xf32> -> vector<8x16xf32>
    %c0_34 = arith.constant 0 : index
    %c0_35 = arith.constant 0 : index
    %60 = vector.load %arg11[%c0_34, %c0_35] : memref<8x16xf32, #tpu.memory_space<vmem>>, vector<8x16xf32>
    tpu.vector_store %arg11[%c0_34, %c0_35], %59 {strides = array<i32>} : memref<8x16xf32, #tpu.memory_space<vmem>>, vector<8x16xf32>,
    return
  }
  func.func @transform_0(%arg0: i32) -> (i32, i32) {
    %c0_i32 = arith.constant 0 : i32
    %c0_i32_0 = arith.constant 0 : i32
    return %arg0, %c0_i32 : i32, i32
  }
  func.func @transform_1(%arg0: i32) -> (i32, i32) {
    %c0_i32 = arith.constant 0 : i32
    %c0_i32_0 = arith.constant 0 : i32
    %c0_i32_1 = arith.constant 0 : i32
    return %c0_i32, %c0_i32_0 : i32, i32
  }
  func.func @transform_2(%arg0: i32) -> (i32, i32) {
    %c0_i32 = arith.constant 0 : i32
    %c0_i32_0 = arith.constant 0 : i32
    %c0_i32_1 = arith.constant 0 : i32
    return %c0_i32, %c0_i32_0 : i32, i32
  }
  func.func @transform_3(%arg0: i32) -> (i32, i32) {
    %c0_i32 = arith.constant 0 : i32
    %c0_i32_0 = arith.constant 0 : i32
    %c0_i32_1 = arith.constant 0 : i32
    return %c0_i32, %c0_i32_0 : i32, i32
  }
  func.func @transform_4(%arg0: i32) -> (i32, i32) {
    %c0_i32 = arith.constant 0 : i32
    %c0_i32_0 = arith.constant 0 : i32
    %c0_i32_1 = arith.constant 0 : i32
    return %c0_i32, %c0_i32_0 : i32, i32
  }
  func.func @transform_5(%arg0: i32) -> (i32, i32) {
    %c0_i32 = arith.constant 0 : i32
    %c0_i32_0 = arith.constant 0 : i32
    %c0_i32_1 = arith.constant 0 : i32
    return %c0_i32, %c0_i32_0 : i32, i32
  }
  func.func @transform_6(%arg0: i32) -> (i32, i32) {
    %c0_i32 = arith.constant 0 : i32
    %c0_i32_0 = arith.constant 0 : i32
    %c0_i32_1 = arith.constant 0 : i32
    return %c0_i32, %c0_i32_0 : i32, i32
  }
  func.func @transform_7(%arg0: i32) -> (i32, i32) {
    %c0_i32 = arith.constant 0 : i32
    %c0_i32_0 = arith.constant 0 : i32
    %c0_i32_1 = arith.constant 0 : i32
    return %c0_i32, %c0_i32_0 : i32, i32
  }
  func.func @transform_8(%arg0: i32) -> (i32, i32) {
    %c0_i32 = arith.constant 0 : i32
    %c0_i32_0 = arith.constant 0 : i32
    %c0_i32_1 = arith.constant 0 : i32
    return %c0_i32, %c0_i32_0 : i32, i32
  }
  func.func @transform_9(%arg0: i32) -> (i32, i32) {
    %c0_i32 = arith.constant 0 : i32
    %c0_i32_0 = arith.constant 0 : i32
    return %arg0, %c0_i32 : i32, i32
  }
  func.func @transform_10(%arg0: i32) -> (i32, i32) {
    %c0_i32 = arith.constant 0 : i32
    %c0_i32_0 = arith.constant 0 : i32
    return %arg0, %c0_i32 : i32, i32
  }
}

</mosaic_0001>

<bundles_post_ra>
// kernel: tpu_custom_call.1
= control target key start
LH: loop header
LB: loop body
LE: loop exit
PB: predicated region body
PF: predicated region fallthrough
CT: control target
= control target key end

     0   :  { %s419_s0 = inlined_call_operand.vmem [shape: f32[8,64], index: 0, kind: input, shape index: {}]   ;;  %s420_s1 = inlined_call_operand.vmem [shape: f32[64,32], index: 1, kind: input, shape index: {}]   ;;  %s421_s2 = inlined_call_operand.vmem [shape: f32[1,32], index: 2, kind: input, shape index: {}]   ;;  %s422_s3 = inlined_call_operand.vmem [shape: f32[32,32], index: 3, kind: input, shape index: {}]   ;;  %s423_s4 = inlined_call_operand.vmem [shape: f32[1,32], index: 4, kind: input, shape index: {}]   ;;  %s424_s5 = inlined_call_operand.vmem [shape: f32[32,4], index: 5, kind: input, shape index: {}]   ;;  %s425_s6 = inlined_call_operand.vmem [shape: f32[1,4], index: 6, kind: input, shape index: {}]   ;;  %s426_s7 = inlined_call_operand.vmem [shape: f32[32,4], index: 7, kind: input, shape index: {}]   ;;  %s427_s8 = inlined_call_operand.vmem [shape: f32[1,4], index: 8, kind: input, shape index: {}]   ;;  %s428_s9 = inlined_call_operand.vmem [shape: f32[8,4], index: 9, kind: input, shape index: {}]   ;;  %s429_s10 = inlined_call_operand.hbm [shape: f32[8,16], index: 10, kind: output, shape index: {}]  }
   0x1   :  { %v44_v0 = vld [vmem:[%s420_s1 + $0x38] sm:$0xff]  ;;  %v43_v1 = vld [vmem:[%s420_s1 + $0x30] sm:$0xff]  ;;  %v42_v2 = vld [vmem:[%s420_s1 + $0x28] sm:$0xff] }
   0x2   :  { %61 = vmatpush.msra.mxu0 %v44_v0  ;;  %v41_v3 = vld [vmem:[%s420_s1 + $0x20] sm:$0xff]  ;;  %v77_v4 = vld [vmem:[%s422_s3 + $0x18] sm:$0xff] }
   0x3   :  { %98 = vmatpush.msra.mxu1 %v77_v4 }
   0x4   :  { %62 = vmatpush.msra.mxu0 %v43_v1 }
   0x6   :  { %63 = vmatpush.msra.mxu0 %v42_v2 }
   0x7   :  { %15 = vsyncpa [#allocation3], 0  ;;  %v40_v5 = vld [vmem:[%s420_s1 + $0x18] sm:$0xff]  ;;  %v39_v6 = vld [vmem:[%s420_s1 + $0x10] sm:$0xff]  ;;  %vm49_vm0 = vcmask 523264   ;;  %vm82_vm1 = vcmask 261120  }
   0x8   :  { %64 = vmatpush.msra.mxu0 %v41_v3  ;;  %v38_v7 = vld [vmem:[%s420_s1 + $0x8] sm:$0xff]  ;;  %v37_v8 = vld [vmem:[%s420_s1] sm:$0xff]  ;;  %v76_v10 = vld [vmem:[%s422_s3 + $0x10] sm:$0xff]  ;;  %vm178_vm2 = vcmask 31744   ;;  %s275_s17 = smov 8   ;;  %vm204_vm3 = vcmask 64512  }
   0x9   :  { %v36_v9 = vld [vmem:[%s419_s0] sm:$0xff]  ;;  %99 = vmatpush.msra.mxu1 %v76_v10  ;;  %v75_v11 = vld [vmem:[%s422_s3 + $0x8] sm:$0xff]  ;;  %v110_v13 = vld [vmem:[%s424_s5 + $0x18] sm:$0xff]  ;;  %s217_s19 = sshll.u32 %s429_s10, 4  ;;  %vm206_vm4 = vcmask 97280   ;;  %vm208_vm5 = vcmask 130048   ;;  %s218_s19 = int_to_ptr.hbm [resolvable:$true] %s217_s19 }
   0xa   :  { %65 = vmatpush.msra.mxu0 %v40_v5  ;;  %v74_v12 = vld [vmem:[%s422_s3] sm:$0xff]  ;;  %v141_v14 = vld [vmem:[%s426_s7 + $0x18] sm:$0xff]  ;;  %130 = vmatpush.msra.mxu2 %v110_v13  ;;  %v109_v19 = vld [vmem:[%s424_s5 + $0x10] sm:$0xff] }
   0xb   :  { %100 = vmatpush.msra.mxu1 %v75_v11  ;;  %158 = vmatpush.msra.mxu3 %v141_v14  ;;  %v234_v15 = vld [vmem:[%s421_s2] ss:$0 sm:$0xff]  ;;  %v140_v20 = vld [vmem:[%s426_s7 + $0x10] sm:$0xff]  ;;  %v108_v21 = vld [vmem:[%s424_s5 + $0x8] sm:$0xff] }
   0xc   :  { %66 = vmatpush.msra.mxu0 %v39_v6  ;;  %131 = vmatpush.msra.mxu2 %v109_v19  ;;  %v139_v22 = vld [vmem:[%s426_s7 + $0x8] sm:$0xff]  ;;  %v107_v23 = vld [vmem:[%s424_s5] sm:$0xff] }
   0xd   :  { %101 = vmatpush.msra.mxu1 %v74_v12  ;;  %159 = vmatpush.msra.mxu3 %v140_v20  ;;  %v138_v24 = vld [vmem:[%s426_s7] sm:$0xff] }
   0xe   :  { %67 = vmatpush.msra.mxu0 %v38_v7  ;;  %132 = vmatpush.msra.mxu2 %v108_v21  ;;  %v235_v25 = vld [vmem:[%s423_s4] ss:$0 sm:$0xff] }
   0xf   :  { %160 = vmatpush.msra.mxu3 %v139_v22  ;;  %v237_v29 = vld [vmem:[%s427_s8] ss:$0 sm:$0xff] }
  0x10   :  { %68 = vmatpush.msra.mxu0 %v37_v8  ;;  %133 = vmatpush.msra.mxu2 %v107_v23  ;;  %v172_v32 = vld [vmem:[%s428_s9] sm:$0xff]  ;;  %s274_s9 = smov 4  }
  0x11   :  { %226 = vmatmul.msk.f32.vlgmr.msra.gmra.mxu0 %vm49_vm0, %v36_v9  ;;  %161 = vmatpush.msra.mxu3 %v138_v24  ;;  %v175_v33 = vmul.f32 -0.5, %v172_v32  ;;  %v236_v42 = vld [vmem:[%s425_s6] ss:$0 sm:$0xff]  ;;  %s276_s6 = smov [#allocation2]  }
  0x12   :  { %s215_s1 = sshll.u32 %s276_s6, 4  ;;  %s216_s1 = int_to_ptr.vmem [resolvable:$true] %s215_s1 }
  0x13   :  { %v176_v37 = vmul.f32 %v175_v33, %v172_v32 }
  0x8e   :  { %v70_v16 = vpop.f32.mrf.mxu0 }
  0x8f   :  { %v71_v17 = vadd.f32 %v234_v15, %v70_v16 }
  0x91   :  { %v73_v18 = vmax.f32 %v71_v17, 0.0 }
  0x93   :  { %227 = vmatmul.msk.f32.vlgmr.msra.gmra.mxu1 %vm82_vm1, %v73_v18 }
 0x110   :  { %v103_v26 = vpop.f32.mrf.mxu1 }
 0x111   :  { %v104_v27 = vadd.f32 %v235_v25, %v103_v26 }
 0x113   :  { %v106_v28 = vmax.f32 %v104_v27, 0.0 }
 0x115   :  { %228 = vmatmul.msk.f32.vlgmr.msra.gmra.mxu2 %vm82_vm1, %v106_v28  ;;  %229 = vmatmul.msk.f32.vlgmr.msra.gmra.mxu3 %vm82_vm1, %v106_v28 }
 0x198   :  { %v163_v30 = vpop.f32.mrf.mxu3  ;;  %v135_v43 = vpop.f32.mrf.mxu2 }
 0x199   :  { %v164_v31 = vadd.f32 %v237_v29, %v163_v30  ;;  %v136_v45 = vadd.f32 %v236_v42, %v135_v43 }
 0x19b   :  { %238 = vtanh.f32 %v164_v31 }
 0x1a1   :  { %v239_v34 = vpop.eup %238 }
 0x1a2   :  { %v167_v35 = vadd.f32 1.0, %v239_v34 }
 0x1a4   :  { %v168_v36 = vmul.f32 6.0, %v167_v35 }
 0x1a6   :  { %v169_v38 = vadd.f32 -10.0, %v168_v36 }
 0x1a8   :  { %v170_v39 = vmul.f32 1.442695, %v169_v38  ;;  %v177_v40 = vsub.f32 %v176_v37, %v169_v38 }
 0x1aa   :  { %240 = vpow2.f32 %v170_v39  ;;  %v179_v41 = vsel %vm178_vm2, %v177_v40, 0.0 }
 0x1ab   :  { %180 = vadd.xlane.f32.xlu0 %v179_v41 }
 0x1b0   :  { %v241_v44 = vpop.eup %240 }
 0x1b1   :  { %v173_v46 = vmul.f32 %v241_v44, %v172_v32 }
 0x1b3   :  { %v174_v47 = vadd.f32 %v173_v46, %v136_v45 }
 0x1b5   :  { %242 = vtanh.f32 %v174_v47 }
 0x1bb   :  { %v243_v48 = vpop.eup %242 }
 0x1bc   :  { %196 = vrot.lane.b32.xlu1 %v243_v48, %s274_s9  ;;  %v185_v49 = vmul.f32 %v243_v48, %v243_v48 }
 0x1be   :  { %v186_v50 = vsub.f32 1.0, %v185_v49 }
 0x1c0   :  { %v187_v51 = vmax.f32 %v186_v50, 0.0 }
 0x1c2   :  { %v188_v52 = vadd.f32 1e-06, %v187_v51 }
 0x1c4   :  { %200 = vrot.lane.b32.xlu1 %v169_v38, %s275_s17  ;;  %244 = vlog2.f32 %v188_v52 }
 0x1c5   :  { %246 = vtanh.f32 %v136_v45 }
 0x1ca   :  { %v245_v53 = vpop.eup %244 }
 0x1cb   :  { %v190_v54 = vmul.f32 0.6931472, %v245_v53  ;;  %v247_v60 = vpop.eup %246 }
 0x1cd   :  { %v191_v55 = vsel %vm178_vm2, %v190_v54, 0.0 }
 0x1ce   :  { %192 = vadd.xlane.f32.xlu0 %v191_v55 }
 0x21e   :  { %v181_v57 = vpop.xlane.xlu0 %180 }
 0x21f   :  { %v230_v58 = vadd.f32 -3.675754, %v181_v57 }
 0x22e   :  { %v197_v56 = vpop.permute.xlu1 %196 }
 0x22f   :  { %v203_v62 = vsel %vm178_vm2, %v247_v60, %v197_v56 }
 0x236   :  { %v201_v59 = vpop.permute.xlu1 %200 }
 0x237   :  { %v205_v0 = vsel %vm204_vm3, %v203_v62, %v201_v59 }
 0x241   :  { %v193_v61 = vpop.xlane.xlu0 %192 }
 0x242   :  { %v194_v63 = vsub.f32 %v230_v58, %v193_v61 }
 0x244   :  { %v207_v1 = vsel %vm206_vm4, %v205_v0, %v194_v63 }
 0x245   :  { %209 = vst.msk [vmem:[#allocation2] sm:$0xff] %vm208_vm5, %v207_v1 }
 0x246   :  { %220 = dma.vmem_to_hbm [thread:$0]  %s216_s1, 128, %s218_s19, [#allocation3]  }
 0x247   :  { %272 = dma.done.wait [#allocation3], 128  }
 0x248   :  { %273 = vsyncadd [#allocation3], 4294967168 }
 0x249   :  { %225 = vsyncpa [#allocation3], 1 }

</bundles_post_ra>
